<compile_context>
chip_gen: v7x
topology: tpu7x:2x2x1
jax: 0.10.0
libtpu: 0.0.40
codegen_flags: <defaults>
</compile_context>

<pallas_src>
import math
import functools

import jax
import jax.numpy as jnp
import numpy as np
from jax import lax
from jax.experimental import pallas as pl
from jax.experimental.pallas import tpu as pltpu


def _round_up(v, m):
    return ((v + m - 1) // m) * m


def _aam_kernel(label_ref, xn_ref, wn_ref, loss_ref, corr_ref,
                m_scr, l_scr, tc_scr,
                *, cos_m, sin_m, th, mm, s, n_class):
    ci = pl.program_id(1)
    n_ci = pl.num_programs(1)
    c_tile = wn_ref.shape[1]

    # ---- per-B-tile init (first C step only): zero the online accumulators --
    @pl.when(ci == 0)
    def _init():
        m_scr[...] = jnp.full_like(m_scr, -jnp.inf)   # running non-target max
        l_scr[...] = jnp.zeros_like(l_scr)            # running non-target sum-exp
        tc_scr[...] = jnp.zeros_like(tc_scr)          # target cosine

    # ---- cosine = xn @ wn  (bf16 MXU inputs, f32 acc), lane-dense (Bt, Ct) --
    cosine = jnp.dot(xn_ref[...], wn_ref[...],
                     preferred_element_type=jnp.float32)

    # ---- target / padding masks from a (1, Ct) lane iota ---------------------
    col = lax.broadcasted_iota(jnp.int32, (1, c_tile), 1)       # (1, Ct)
    lbl_local = label_ref[...] - ci * c_tile                    # (Bt, 1)
    is_tgt = col == lbl_local                                   # (Bt, Ct)
    if n_class % c_tile != 0:   # static: also mask padded class columns
        nt_mask = jnp.logical_and(col + ci * c_tile < n_class,
                                  jnp.logical_not(is_tgt))
    else:
        nt_mask = jnp.logical_not(is_tgt)

    logits = cosine * s
    logits_nt = jnp.where(nt_mask, logits, -jnp.inf)            # non-target only

    # ---- accumulate the per-row target cosine (margin applied at finalize) --
    tc_scr[...] = tc_scr[...] + jnp.sum(jnp.where(is_tgt, cosine, 0.0),
                                        axis=-1, keepdims=True)

    # ---- online softmax over the non-target logits ---------------------------
    tile_max = jnp.max(logits_nt, axis=-1, keepdims=True)       # (Bt, 1)
    m_old = m_scr[...]
    m_new = jnp.maximum(m_old, tile_max)
    l_scr[...] = (jnp.exp(m_old - m_new) * l_scr[...]
                  + jnp.sum(jnp.exp(logits_nt - m_new), axis=-1, keepdims=True))
    m_scr[...] = m_new

    # ---- finalize (last C step): per-row margin, CE loss, top-1 correct -----
    @pl.when(ci == n_ci - 1)
    def _fin():
        c_t = tc_scr[...]                                       # (Bt, 1)
        sine = jnp.sqrt(jnp.maximum(1.0 - c_t * c_t, 0.0))
        phi = c_t * cos_m - sine * sin_m
        phi = jnp.where(c_t - th > 0, phi, c_t - mm)
        tgt_logit = phi * s                                     # (Bt, 1)

        m_nt = m_scr[...]
        l_nt = l_scr[...]
        m_full = jnp.maximum(m_nt, tgt_logit)
        lse = m_full + jnp.log(l_nt * jnp.exp(m_nt - m_full)
                               + jnp.exp(tgt_logit - m_full))
        loss_ref[...] = lse - tgt_logit
        corr_ref[...] = (tgt_logit >= m_nt).astype(jnp.float32)


def aam_softmax_forward(x, weight, label, *, m, s,
                        b_tile=512, c_tile=1024,
                        compute_dtype=jnp.bfloat16):
    """Returns (loss, prec1) matching the PyTorch AAMsoftmax.forward semantics."""
    B, D = x.shape
    C = weight.shape[0]

    bt = min(b_tile, _round_up(B, 8))
    # keep >= 2 B blocks (v7x megacore) when the batch is large enough
    if bt >= B and B >= 16:
        bt = _round_up((B + 1) // 2, 8)
    bt = _round_up(bt, 8)
    ct = _round_up(min(c_tile, _round_up(C, 128)), 128)
    B_pad = _round_up(B, bt)
    C_pad = _round_up(C, ct)

    # Normalize in f32 (rsqrt), cast to bf16, pad — kernel streams bf16 only.
    xf = x.astype(jnp.float32)
    xn = xf * lax.rsqrt(jnp.maximum(jnp.sum(xf * xf, -1, keepdims=True), 1e-24))
    xn_p = jnp.pad(xn.astype(compute_dtype), ((0, B_pad - B), (0, 0)))

    wf = weight.astype(jnp.float32)
    wn = wf * lax.rsqrt(jnp.maximum(jnp.sum(wf * wf, -1, keepdims=True), 1e-24))
    wn_p = jnp.pad(wn.T.astype(compute_dtype), ((0, 0), (0, C_pad - C)))

    lbl_p = jnp.pad(label.astype(jnp.int32), (0, B_pad - B)).reshape(B_pad, 1)

    cos_m, sin_m = math.cos(m), math.sin(m)
    th = math.cos(math.pi - m)
    mm = math.sin(math.pi - m) * m

    kernel = functools.partial(
        _aam_kernel, cos_m=cos_m, sin_m=sin_m, th=th, mm=mm, s=float(s),
        n_class=C)

    grid = (B_pad // bt, C_pad // ct)
    itemsize = jnp.dtype(compute_dtype).itemsize

    cost = pl.CostEstimate(
        flops=2 * B_pad * C_pad * D + 6 * B_pad * C_pad,
        transcendentals=B_pad * C_pad + 2 * B_pad,
        bytes_accessed=(itemsize * (B_pad * D + grid[0] * D * C_pad)
                        + 4 * 3 * B_pad))

    # VMEM budget from the actual working set (double-buffered bf16 I/O tiles
    # plus f32 (bt, ct) temporaries), clamped to [16 MiB, 40 MiB].
    work = (2 * D * ct * itemsize + 2 * bt * D * itemsize
            + 8 * bt * ct * 4 + 8 * bt * 4)
    vmem_limit = int(min(40 * 1024 * 1024, max(16 * 1024 * 1024, 2 * work)))

    loss_i, corr_i = pl.pallas_call(
        kernel,
        out_shape=(jax.ShapeDtypeStruct((B_pad, 1), jnp.float32),
                   jax.ShapeDtypeStruct((B_pad, 1), jnp.float32)),
        grid=grid,
        in_specs=[
            pl.BlockSpec((bt, 1), lambda bi, ci: (bi, 0)),    # label
            pl.BlockSpec((bt, D), lambda bi, ci: (bi, 0)),    # normalized x (bf16)
            pl.BlockSpec((D, ct), lambda bi, ci: (0, ci)),    # normalized W.T (bf16)
        ],
        out_specs=(
            pl.BlockSpec((bt, 1), lambda bi, ci: (bi, 0)),    # per-example loss
            pl.BlockSpec((bt, 1), lambda bi, ci: (bi, 0)),    # per-example correct
        ),
        scratch_shapes=[
            pltpu.VMEM((bt, 1), jnp.float32),     # running non-target max
            pltpu.VMEM((bt, 1), jnp.float32),     # running non-target sum-exp
            pltpu.VMEM((bt, 1), jnp.float32),     # target cosine
        ],
        compiler_params=pltpu.CompilerParams(
            dimension_semantics=("parallel", "arbitrary"),
            vmem_limit_bytes=vmem_limit),
        cost_estimate=cost,
    )(lbl_p, xn_p, wn_p)

    loss = jnp.mean(loss_i[:B, 0])
    prec1 = 100.0 * jnp.mean(corr_i[:B, 0])
    return loss, prec1


def _reference(x, weight, label, *, m, s, compute_dtype=jnp.bfloat16):
    """Pure-JAX reference mirroring the kernel's compute path
    (f32 rsqrt normalization + bf16 MXU inputs, f32 accumulate)."""
    cos_m, sin_m = math.cos(m), math.sin(m)
    th = math.cos(math.pi - m)
    mm = math.sin(math.pi - m) * m
    xn = x * lax.rsqrt(jnp.maximum(jnp.sum(x * x, -1, keepdims=True), 1e-24))
    wn = weight * lax.rsqrt(jnp.maximum(jnp.sum(weight * weight, -1,
                                                keepdims=True), 1e-24))
    cosine = jnp.dot(xn.astype(compute_dtype), wn.T.astype(compute_dtype),
                     preferred_element_type=jnp.float32)
    sine = jnp.sqrt(jnp.clip(1.0 - cosine * cosine, 0.0, 1.0))
    phi = cosine * cos_m - sine * sin_m
    phi = jnp.where(cosine - th > 0, phi, cosine - mm)
    cls = jnp.arange(weight.shape[0])[None, :]
    logits = jnp.where(cls == label[:, None], phi, cosine) * s
    logp = jax.nn.log_softmax(logits, axis=-1)
    loss = -jnp.mean(jnp.take_along_axis(logp, label[:, None], axis=1))
    prec = 100.0 * jnp.mean((jnp.argmax(logits, -1) == label).astype(jnp.float32))
    return loss, prec


if __name__ == "__main__":
    # Small synthetic setup consistent with the module's __init__ shapes.
    n_class, hidden_dim = 16, 32
    batch = 8
    m_margin, scale = 0.2, 30.0

    key = jax.random.PRNGKey(0)
    kx, kw, kl = jax.random.split(key, 3)

    x = jax.random.normal(kx, (batch, hidden_dim), dtype=jnp.float32)
    xavier_std = math.sqrt(2.0 / (n_class + hidden_dim))
    weight = xavier_std * jax.random.normal(kw, (n_class, hidden_dim),
                                            dtype=jnp.float32)
    label = jax.random.randint(kl, (batch,), 0, n_class, dtype=jnp.int32)

    loss, prec1 = aam_softmax_forward(x, weight, label, m=m_margin, s=scale)
    loss = jax.block_until_ready(loss)
    prec1 = jax.block_until_ready(prec1)

    ref_loss, ref_prec = _reference(x, weight, label, m=m_margin, s=scale)
    # bf16 MXU inputs -> slightly looser tolerance than a pure-f32 comparison.
    np.testing.assert_allclose(np.asarray(loss), np.asarray(ref_loss),
                               rtol=2e-3, atol=2e-3)
    np.testing.assert_allclose(np.asarray(prec1), np.asarray(ref_prec),
                               rtol=1e-3, atol=1e-3)

    print("KERNEL_OK")
</pallas_src>

<mosaic_0001>
module attributes {stable_mosaic.version = 11 : i64} {
  func.func @_aam_kernel(%arg0: i32, %arg1: i32, %arg2: memref<8x1xi32, #tpu.memory_space<vmem>>, %arg3: memref<8x32xbf16, #tpu.memory_space<vmem>>, %arg4: memref<32x128xbf16, #tpu.memory_space<vmem>>, %arg5: memref<8x1xf32, #tpu.memory_space<vmem>>, %arg6: memref<8x1xf32, #tpu.memory_space<vmem>>, %arg7: memref<8x1xf32, #tpu.memory_space<vmem>>, %arg8: memref<8x1xf32, #tpu.memory_space<vmem>>, %arg9: memref<8x1xf32, #tpu.memory_space<vmem>>) attributes {dimension_semantics = [#tpu.dimension_semantics<parallel>, #tpu.dimension_semantics<arbitrary>], iteration_bounds = array<i64: 1, 1>, scalar_prefetch = 0 : i64, scratch_operands = 3 : i64, tpu.core_type = #tpu.core_type<tc>, window_params = [{transform_indices = @transform_0, window_bounds = array<i64: 8, 1>}, {transform_indices = @transform_1, window_bounds = array<i64: 8, 32>}, {transform_indices = @transform_2, window_bounds = array<i64: 32, 128>}, {transform_indices = @transform_3, window_bounds = array<i64: 8, 1>}, {transform_indices = @transform_4, window_bounds = array<i64: 8, 1>}]} {
    %c0_i32 = arith.constant 0 : i32
    %0 = arith.cmpi eq, %arg1, %c0_i32 : i32
    %1 = arith.extui %0 : i1 to i32
    %c0_i32_0 = arith.constant 0 : i32
    %2 = arith.cmpi ne, %1, %c0_i32_0 : i32
    scf.if %2 {
      %cst_28 = arith.constant 0xFF800000 : f32
      %52 = vector.broadcast %cst_28 : f32 to vector<8x1xf32>
      %c0_29 = arith.constant 0 : index
      %c0_30 = arith.constant 0 : index
      %53 = vector.load %arg7[%c0_29, %c0_30] : memref<8x1xf32, #tpu.memory_space<vmem>>, vector<8x1xf32>
      tpu.vector_store %arg7[%c0_29, %c0_30], %52 {strides = array<i32>} : memref<8x1xf32, #tpu.memory_space<vmem>>, vector<8x1xf32>,
      %cst_31 = arith.constant 0.000000e+00 : f32
      %54 = vector.broadcast %cst_31 : f32 to vector<8x1xf32>
      %c0_32 = arith.constant 0 : index
      %c0_33 = arith.constant 0 : index
      %55 = vector.load %arg8[%c0_32, %c0_33] : memref<8x1xf32, #tpu.memory_space<vmem>>, vector<8x1xf32>
      tpu.vector_store %arg8[%c0_32, %c0_33], %54 {strides = array<i32>} : memref<8x1xf32, #tpu.memory_space<vmem>>, vector<8x1xf32>,
      %cst_34 = arith.constant 0.000000e+00 : f32
      %56 = vector.broadcast %cst_34 : f32 to vector<8x1xf32>
      %c0_35 = arith.constant 0 : index
      %c0_36 = arith.constant 0 : index
      %57 = vector.load %arg9[%c0_35, %c0_36] : memref<8x1xf32, #tpu.memory_space<vmem>>, vector<8x1xf32>
      tpu.vector_store %arg9[%c0_35, %c0_36], %56 {strides = array<i32>} : memref<8x1xf32, #tpu.memory_space<vmem>>, vector<8x1xf32>,
    } else {
    }
    %c0 = arith.constant 0 : index
    %c0_1 = arith.constant 0 : index
    %3 = vector.load %arg3[%c0, %c0_1] : memref<8x32xbf16, #tpu.memory_space<vmem>>, vector<8x32xbf16>
    %c0_2 = arith.constant 0 : index
    %c0_3 = arith.constant 0 : index
    %4 = vector.load %arg4[%c0_2, %c0_3] : memref<32x128xbf16, #tpu.memory_space<vmem>>, vector<32x128xbf16>
    %cst = arith.constant dense<0.000000e+00> : vector<8x128xf32>
    %5 = tpu.matmul %3, %4, %cst {dimension_numbers = #tpu.dot_dimension_numbers<[1], [0], [0], [1], [0, 0, 1, 1], [], []>} : vector<8x32xbf16>, vector<32x128xbf16>, vector<8x128xf32> -> vector<8x128xf32>
    %6 = tpu.iota {dimensions = array<i32: 1>} : vector<1x128xi32>
    %c0_4 = arith.constant 0 : index
    %c0_5 = arith.constant 0 : index
    %7 = vector.load %arg2[%c0_4, %c0_5] : memref<8x1xi32, #tpu.memory_space<vmem>>, vector<8x1xi32>
    %c128_i32 = arith.constant 128 : i32
    %8 = arith.muli %arg1, %c128_i32 : i32
    %9 = vector.broadcast %8 : i32 to vector<8x1xi32>
    %10 = arith.subi %7, %9 : vector<8x1xi32>
    %11 = vector.broadcast %6 : vector<1x128xi32> to vector<8x128xi32>
    %12 = vector.broadcast %10 : vector<8x1xi32> to vector<8x128xi32>
    %13 = arith.cmpi eq, %11, %12 : vector<8x128xi32>
    %c128_i32_6 = arith.constant 128 : i32
    %14 = arith.muli %arg1, %c128_i32_6 : i32
    %15 = vector.broadcast %14 : i32 to vector<1x128xi32>
    %16 = arith.addi %6, %15 : vector<1x128xi32>
    %c16_i32 = arith.constant 16 : i32
    %17 = vector.broadcast %c16_i32 : i32 to vector<1x128xi32>
    %18 = arith.cmpi slt, %16, %17 : vector<1x128xi32>
    %cst_7 = arith.constant dense<true> : vector<8x128xi1>
    %19 = arith.xori %13, %cst_7 : vector<8x128xi1>
    %20 = vector.broadcast %18 : vector<1x128xi1> to vector<8x128xi1>
    %21 = arith.andi %20, %19 : vector<8x128xi1>
    %cst_8 = arith.constant 3.000000e+01 : f32
    %22 = vector.broadcast %cst_8 : f32 to vector<8x128xf32>
    %23 = arith.mulf %5, %22 : vector<8x128xf32>
    %cst_9 = arith.constant 0xFF800000 : f32
    %24 = vector.broadcast %cst_9 : f32 to vector<8x128xf32>
    %25 = arith.select %21, %23, %24 : vector<8x128xi1>, vector<8x128xf32>
    %c0_10 = arith.constant 0 : index
    %c0_11 = arith.constant 0 : index
    %26 = vector.load %arg9[%c0_10, %c0_11] : memref<8x1xf32, #tpu.memory_space<vmem>>, vector<8x1xf32>
    %cst_12 = arith.constant 0.000000e+00 : f32
    %27 = vector.broadcast %cst_12 : f32 to vector<8x128xf32>
    %28 = arith.select %13, %5, %27 : vector<8x128xi1>, vector<8x128xf32>
    %cst_13 = arith.constant dense<0.000000e+00> : vector<8xf32>
    %29 = vector.multi_reduction <add>, %28, %cst_13 [1] : vector<8x128xf32> to vector<8xf32>
    %30 = vector.shape_cast %29 : vector<8xf32> to vector<8x1xf32>
    %31 = arith.addf %26, %30 : vector<8x1xf32>
    %c0_14 = arith.constant 0 : index
    %c0_15 = arith.constant 0 : index
    %32 = vector.load %arg9[%c0_14, %c0_15] : memref<8x1xf32, #tpu.memory_space<vmem>>, vector<8x1xf32>
    tpu.vector_store %arg9[%c0_14, %c0_15], %31 {strides = array<i32>} : memref<8x1xf32, #tpu.memory_space<vmem>>, vector<8x1xf32>,
    %cst_16 = arith.constant dense<0xFF800000> : vector<8xf32>
    %33 = vector.multi_reduction <maximumf>, %25, %cst_16 [1] : vector<8x128xf32> to vector<8xf32>
    %34 = vector.shape_cast %33 : vector<8xf32> to vector<8x1xf32>
    %c0_17 = arith.constant 0 : index
    %c0_18 = arith.constant 0 : index
    %35 = vector.load %arg7[%c0_17, %c0_18] : memref<8x1xf32, #tpu.memory_space<vmem>>, vector<8x1xf32>
    %36 = arith.maximumf %35, %34 : vector<8x1xf32>
    %37 = arith.subf %35, %36 : vector<8x1xf32>
    %38 = math.exp %37 : vector<8x1xf32>
    %c0_19 = arith.constant 0 : index
    %c0_20 = arith.constant 0 : index
    %39 = vector.load %arg8[%c0_19, %c0_20] : memref<8x1xf32, #tpu.memory_space<vmem>>, vector<8x1xf32>
    %40 = arith.mulf %38, %39 : vector<8x1xf32>
    %41 = vector.broadcast %36 : vector<8x1xf32> to vector<8x128xf32>
    %42 = arith.subf %25, %41 : vector<8x128xf32>
    %43 = math.exp %42 : vector<8x128xf32>
    %cst_21 = arith.constant dense<0.000000e+00> : vector<8xf32>
    %44 = vector.multi_reduction <add>, %43, %cst_21 [1] : vector<8x128xf32> to vector<8xf32>
    %45 = vector.shape_cast %44 : vector<8xf32> to vector<8x1xf32>
    %46 = arith.addf %40, %45 : vector<8x1xf32>
    %c0_22 = arith.constant 0 : index
    %c0_23 = arith.constant 0 : index
    %47 = vector.load %arg8[%c0_22, %c0_23] : memref<8x1xf32, #tpu.memory_space<vmem>>, vector<8x1xf32>
    tpu.vector_store %arg8[%c0_22, %c0_23], %46 {strides = array<i32>} : memref<8x1xf32, #tpu.memory_space<vmem>>, vector<8x1xf32>,
    %c0_24 = arith.constant 0 : index
    %c0_25 = arith.constant 0 : index
    %48 = vector.load %arg7[%c0_24, %c0_25] : memref<8x1xf32, #tpu.memory_space<vmem>>, vector<8x1xf32>
    tpu.vector_store %arg7[%c0_24, %c0_25], %36 {strides = array<i32>} : memref<8x1xf32, #tpu.memory_space<vmem>>, vector<8x1xf32>,
    %c0_i32_26 = arith.constant 0 : i32
    %49 = arith.cmpi eq, %arg1, %c0_i32_26 : i32
    %50 = arith.extui %49 : i1 to i32
    %c0_i32_27 = arith.constant 0 : i32
    %51 = arith.cmpi ne, %50, %c0_i32_27 : i32
    scf.if %51 {
      %c0_28 = arith.constant 0 : index
      %c0_29 = arith.constant 0 : index
      %52 = vector.load %arg9[%c0_28, %c0_29] : memref<8x1xf32, #tpu.memory_space<vmem>>, vector<8x1xf32>
      %53 = arith.mulf %52, %52 : vector<8x1xf32>
      %cst_30 = arith.constant 1.000000e+00 : f32
      %54 = vector.broadcast %cst_30 : f32 to vector<8x1xf32>
      %55 = arith.subf %54, %53 : vector<8x1xf32>
      %cst_31 = arith.constant 0.000000e+00 : f32
      %56 = vector.broadcast %cst_31 : f32 to vector<8x1xf32>
      %57 = arith.maximumf %55, %56 : vector<8x1xf32>
      %58 = math.sqrt %57 : vector<8x1xf32>
      %cst_32 = arith.constant 0.980066597 : f32
      %59 = vector.broadcast %cst_32 : f32 to vector<8x1xf32>
      %60 = arith.mulf %52, %59 : vector<8x1xf32>
      %cst_33 = arith.constant 0.198669329 : f32
      %61 = vector.broadcast %cst_33 : f32 to vector<8x1xf32>
      %62 = arith.mulf %58, %61 : vector<8x1xf32>
      %63 = arith.subf %60, %62 : vector<8x1xf32>
      %cst_34 = arith.constant -0.980066597 : f32
      %64 = vector.broadcast %cst_34 : f32 to vector<8x1xf32>
      %65 = arith.subf %52, %64 : vector<8x1xf32>
      %cst_35 = arith.constant 0.000000e+00 : f32
      %66 = vector.broadcast %cst_35 : f32 to vector<8x1xf32>
      %67 = arith.cmpf ogt, %65, %66 : vector<8x1xf32>
      %cst_36 = arith.constant 0.0397338644 : f32
      %68 = vector.broadcast %cst_36 : f32 to vector<8x1xf32>
      %69 = arith.subf %52, %68 : vector<8x1xf32>
      %70 = arith.select %67, %63, %69 : vector<8x1xi1>, vector<8x1xf32>
      %cst_37 = arith.constant 3.000000e+01 : f32
      %71 = vector.broadcast %cst_37 : f32 to vector<8x1xf32>
      %72 = arith.mulf %70, %71 : vector<8x1xf32>
      %c0_38 = arith.constant 0 : index
      %c0_39 = arith.constant 0 : index
      %73 = vector.load %arg7[%c0_38, %c0_39] : memref<8x1xf32, #tpu.memory_space<vmem>>, vector<8x1xf32>
      %c0_40 = arith.constant 0 : index
      %c0_41 = arith.constant 0 : index
      %74 = vector.load %arg8[%c0_40, %c0_41] : memref<8x1xf32, #tpu.memory_space<vmem>>, vector<8x1xf32>
      %75 = arith.maximumf %73, %72 : vector<8x1xf32>
      %76 = arith.subf %73, %75 : vector<8x1xf32>
      %77 = math.exp %76 : vector<8x1xf32>
      %78 = arith.mulf %74, %77 : vector<8x1xf32>
      %79 = arith.subf %72, %75 : vector<8x1xf32>
      %80 = math.exp %79 : vector<8x1xf32>
      %81 = arith.addf %78, %80 : vector<8x1xf32>
      %82 = math.log %81 : vector<8x1xf32>
      %83 = arith.addf %75, %82 : vector<8x1xf32>
      %84 = arith.subf %83, %72 : vector<8x1xf32>
      %c0_42 = arith.constant 0 : index
      %c0_43 = arith.constant 0 : index
      %85 = vector.load %arg5[%c0_42, %c0_43] : memref<8x1xf32, #tpu.memory_space<vmem>>, vector<8x1xf32>
      tpu.vector_store %arg5[%c0_42, %c0_43], %84 {strides = array<i32>} : memref<8x1xf32, #tpu.memory_space<vmem>>, vector<8x1xf32>,
      %86 = arith.cmpf oge, %72, %73 : vector<8x1xf32>
      %87 = arith.extui %86 : vector<8x1xi1> to vector<8x1xi32>
      %88 = arith.sitofp %87 : vector<8x1xi32> to vector<8x1xf32>
      %c0_44 = arith.constant 0 : index
      %c0_45 = arith.constant 0 : index
      %89 = vector.load %arg6[%c0_44, %c0_45] : memref<8x1xf32, #tpu.memory_space<vmem>>, vector<8x1xf32>
      tpu.vector_store %arg6[%c0_44, %c0_45], %88 {strides = array<i32>} : memref<8x1xf32, #tpu.memory_space<vmem>>, vector<8x1xf32>,
    } else {
    }
    return
  }
  func.func @transform_0(%arg0: i32, %arg1: i32) -> (i32, i32) {
    %c0_i32 = arith.constant 0 : i32
    %c0_i32_0 = arith.constant 0 : i32
    return %arg0, %c0_i32 : i32, i32
  }
  func.func @transform_1(%arg0: i32, %arg1: i32) -> (i32, i32) {
    %c0_i32 = arith.constant 0 : i32
    %c0_i32_0 = arith.constant 0 : i32
    return %arg0, %c0_i32 : i32, i32
  }
  func.func @transform_2(%arg0: i32, %arg1: i32) -> (i32, i32) {
    %c0_i32 = arith.constant 0 : i32
    %c0_i32_0 = arith.constant 0 : i32
    return %c0_i32, %arg1 : i32, i32
  }
  func.func @transform_3(%arg0: i32, %arg1: i32) -> (i32, i32) {
    %c0_i32 = arith.constant 0 : i32
    %c0_i32_0 = arith.constant 0 : i32
    return %arg0, %c0_i32 : i32, i32
  }
  func.func @transform_4(%arg0: i32, %arg1: i32) -> (i32, i32) {
    %c0_i32 = arith.constant 0 : i32
    %c0_i32_0 = arith.constant 0 : i32
    return %arg0, %c0_i32 : i32, i32
  }
}

</mosaic_0001>

<bundles_post_ra>
// kernel: tpu_custom_call.1
= control target key start
LH: loop header
LB: loop body
LE: loop exit
PB: predicated region body
PF: predicated region fallthrough
CT: control target
= control target key end

     0   :  { %10 = vsyncpa [#allocation6], 0  ;;  %s259_s15 = smov [#allocation5]   ;;  %s333_s0 = inlined_call_operand.vmem [shape: s32[8,1], index: 0, kind: input, shape index: {}]   ;;  %s334_s1 = inlined_call_operand.hbm [shape: bf16[8,32], index: 1, kind: input, shape index: {}]   ;;  %s335_s2 = inlined_call_operand.vmem [shape: bf16[32,128], index: 2, kind: input, shape index: {}]   ;;  %s336_s3 = inlined_call_operand.vmem [shape: f32[8,1], index: 3, kind: output, shape index: {0}]   ;;  %s337_s4 = inlined_call_operand.vmem [shape: f32[8,1], index: 4, kind: output, shape index: {1}]  }
   0x1   :  { %s19_s16 = sshll.u32 %s259_s15, 4  ;;  %s235_s19 = scalar_lea.hbm %s334_s1, 64  ;;  %s20_s16 = int_to_ptr.vmem [resolvable:$true] %s19_s16 }
   0x2   :  { %p236_p0 = scmp.ne.s32.totalorder %s334_s1, %s235_s19  ;;  %p239_p1 = scmp.lt.u32.totalorder %s235_s19, %s334_s1 }
   0x4   :  { %p241_p2 = pnand %p239_p1, %p236_p0 }
   0x6   :  { %244 = shalt.err (!%p241_p2)
}
   0x7   :  { %s245_s24 = scalar_lea.vmem %s20_s16, 64  ;;  %p250_p4 = scmp.lt.s32.totalorder %s20_s16, %s20_s16 }
   0x8   :  { %p246_p3 = scmp.ne.s32.totalorder %s20_s16, %s245_s24  ;;  %p251_p5 = scmp.lt.s32.totalorder %s245_s24, %s245_s24 }
   0xa   :  { %p252_p6 = por %p251_p5, %p250_p4 }
   0xc   :  { %p253_p7 = pnand %p252_p6, %p246_p3 }
   0xe   :  { %256 = shalt.err (!%p253_p7)
}
   0xf   :  { %22 = dma.hbm_to_vmem [thread:$0]  %s334_s1, 64, %s20_s16, [#allocation6]  }
  0x10   :  { %257 = dma.done.wait [#allocation6], 64  }
  0x11   :  { %258 = vsyncadd [#allocation6], 4294967232  ;;  %v260_v0 = vmov 0.0   ;;  %vm261_vm0 = vmmov 0   ;;  %v262_v1 = vmov 0   ;;  %v221_v2 = vld [vmem:[%s335_s2] sm:$0xff]   ;;  %v98_v7 = vlaneseq }
  0x12   :  { %205 = vmatprep.subr.bf16.mxu0 %v260_v0  ;;  %209 = vmatprep.mubr.msk.bf16.mxu0 %vm261_vm0, %v260_v0  ;;  %v222_v3 = vld [vmem:[%s335_s2 + $0x8] sm:$0xff]   ;;  %v100_v4 = vld [vmem:[%s333_s0] sm:$0xff]  ;;  %vm54_vm1 = vcmask 261120   ;;  %vm33_vm2 = vcmask 7168   ;;  %v263_v6 = vmov -inf   ;;  %vm264_vm4 = vmmov 1  }
  0x13   :  { %219 = vset.pattern.permute.xlu0 %v262_v1  ;;  %220 = vset.pattern.permute.xlu1 %v262_v1  ;;  %v37_v5 = vld [vmem:[#allocation5] sm:$0xf]  ;;  %34 = vst.msk [vmem:[#allocation2] sm:$0xff] %vm33_vm2, %v263_v6  ;;  %35 = vst.msk [vmem:[#allocation3] sm:$0xff] %vm33_vm2, %v260_v0  ;;  %v99_v8 = vand.u32 127, %v98_v7 }
  0x14   :  { %206 = vmatpush3.bf16.msra.mxu0 %v221_v2  ;;  %105 = vperm.xlu0 %219, %v100_v4   ;;  %36 = vst.msk [vmem:[#allocation4] sm:$0xff] %vm33_vm2, %v260_v0 }
  0x15   :  { %207 = vmatprep.subr.bf16.mxu0 %v260_v0  ;;  %vm109_vm6 = vcmp.lt.s32.totalorder %v99_v8, 16 }
  0x18   :  { %208 = vmatpush3.bf16.msra.mxu0 %v222_v3 }
  0x1a   :  { %v125_v16 = vld [vmem:[#allocation2] sm:$0xff]  ;;  %v130_v51 = vld [vmem:[#allocation3] sm:$0xff] }
  0x1b   :  { %210 = vmatmul.mubr.msk.bf16.vlgmr.msra.gmra.mrb[0].mxu0 %vm54_vm1, %v37_v5  ;;  %v116_v25 = vld [vmem:[#allocation4] sm:$0xff] }
  0x93   :  { %v106_v9 = vpop.permute.xlu0 %105 }
  0x94   :  { %vm107_vm3 = vcmp.eq.s32.totalorder %v99_v8, %v106_v9 }
  0x95   :  { %vm110_vm5 = vmxor %vm107_vm3, %vm264_vm4 }
  0x96   :  { %vm113_vm7 = vmand %vm109_vm6, %vm110_vm5 }
  0xee   :  { %v92_v10 = vpop.f32.mrb[0].mxu0 }
  0xef   :  { %v114_v11 = vmul.f32 30.0, %v92_v10  ;;  %v211_v12 = vpop.f32.mrb[1].mxu0  ;;  %v117_v20 = vsel %vm107_vm3, %v92_v10, 0.0 }
  0xf0   :  { %v95_v13 = vpop.f32.mrb[2].mxu0 }
  0xf1   :  { %v212_v14 = vpop.f32.mrb[3].mxu0  ;;  %v115_v15 = vsel %vm113_vm7, %v114_v11, -inf }
  0xf2   :  { %123 = vmax.xlane.f32.xlu0 %v115_v15 }
 0x17f   :  { %v124_v17 = vpop.xlane.xlu0 %123 }
 0x180   :  { %v126_v18 = vmax.f32 %v125_v16, %v124_v17 }
 0x182   :  { %v127_v19 = vsub.f32 %v125_v16, %v126_v18  ;;  %144 = vst.msk [vmem:[#allocation2] sm:$0xff] %vm33_vm2, %v126_v18  ;;  %134 = vperm.xlu1 %220, %v126_v18  }
 0x184   :  { %v128_v46 = vmul.f32 1.442695, %v127_v19 }
 0x189   :  { %v167_v44 = vld [vmem:[#allocation2] sm:$0xff] }
 0x1a6   :  { %118 = vadd.xlane.f32.xlu1 %v117_v20 }
 0x201   :  { %v135_v21 = vpop.permute.xlu1 %134 }
 0x202   :  { %v137_v22 = vsub.f32 %v115_v15, %v135_v21 }
 0x204   :  { %v138_v23 = vmul.f32 1.442695, %v137_v22 }
 0x206   :  { %223 = vpow2.f32 %v138_v23 }
 0x210   :  { %v224_v24 = vpop.eup %223 }
 0x211   :  { %140 = vadd.xlane.f32.xlu0 %v224_v24 }
 0x233   :  { %v119_v26 = vpop.xlane.xlu1 %118 }
 0x234   :  { %v120_v27 = vadd.f32 %v119_v26, %v116_v25 }
 0x236   :  { %122 = vst.msk [vmem:[#allocation4] sm:$0xff] %vm33_vm2, %v120_v27 }
 0x23d   :  { %v148_v28 = vld [vmem:[#allocation4] sm:$0xff] }
 0x23e   :  { %v149_v29 = vmul.f32 %v148_v28, %v148_v28  ;;  %v199_v37 = vadd.f32 0.9800666, %v148_v28  ;;  %v159_v38 = vmul.f32 0.9800666, %v148_v28  ;;  %v200_v41 = vadd.f32 -0.039733864, %v148_v28 }
 0x240   :  { %v150_v30 = vsub.f32 1.0, %v149_v29  ;;  %vm163_vm10 = vcmp.gt.f32.partialorder %v199_v37, 0.0 }
 0x242   :  { %v151_v31 = vmax.f32 %v150_v30, 0.0 }
 0x244   :  { %225 = vrsqrt.f32 %v151_v31  ;;  %vm154_vm8 = vcmp.eq.f32.partialorder %v151_v31, inf  ;;  %v157_v34 = vand.u32 2147483648, %v151_v31  ;;  %vm156_vm9 = vcmp.eq.f32.partialorder %v151_v31, 0.0 }
 0x245   :  { %227 = vpow2.f32 %v128_v46 }
 0x24e   :  { %v226_v32 = vpop.eup %225 }
 0x24f   :  { %v153_v33 = vmul.f32 %v226_v32, %v151_v31  ;;  %v228_v50 = vpop.eup %227 }
 0x250   :  { %v131_v54 = vmul.f32 %v228_v50, %v130_v51 }
 0x251   :  { %v155_v35 = vsel %vm154_vm8, %v151_v31, %v153_v33 }
 0x252   :  { %v158_v36 = vsel %vm156_vm9, %v157_v34, %v155_v35 }
 0x253   :  { %v160_v39 = vmul.f32 0.19866933, %v158_v36 }
 0x255   :  { %v161_v40 = vsub.f32 %v159_v38, %v160_v39 }
 0x257   :  { %v165_v42 = vsel %vm163_vm10, %v161_v40, %v200_v41 }
 0x258   :  { %v166_v43 = vmul.f32 30.0, %v165_v42 }
 0x25a   :  { %vm183_vm11 = vcmp.ge.f32.partialorder %v166_v43, %v167_v44  ;;  %v169_v47 = vmax.f32 %v167_v44, %v166_v43 }
 0x25b   :  { %v201_v45 = vsel %vm183_vm11, 1.0, %v260_v0 }
 0x25c   :  { %186 = vst.msk [vmem:[%s337_s4] sm:$0xff] %vm33_vm2, %v201_v45  ;;  %v170_v48 = vsub.f32 %v167_v44, %v169_v47  ;;  %v174_v49 = vsub.f32 %v166_v43, %v169_v47 }
 0x25e   :  { %v171_v52 = vmul.f32 1.442695, %v170_v48  ;;  %v175_v53 = vmul.f32 1.442695, %v174_v49 }
 0x260   :  { %229 = vpow2.f32 %v171_v52 }
 0x261   :  { %231 = vpow2.f32 %v175_v53 }
 0x26a   :  { %v230_v57 = vpop.eup %229 }
 0x26b   :  { %v232_v60 = vpop.eup %231 }
 0x29e   :  { %v141_v55 = vpop.xlane.xlu0 %140 }
 0x29f   :  { %v142_v56 = vadd.f32 %v141_v55, %v131_v54 }
 0x2a1   :  { %143 = vst.msk [vmem:[#allocation3] sm:$0xff] %vm33_vm2, %v142_v56 }
 0x2a8   :  { %v168_v58 = vld [vmem:[#allocation3] sm:$0xff] }
 0x2a9   :  { %v173_v59 = vmul.f32 %v230_v57, %v168_v58 }
 0x2ab   :  { %v177_v61 = vadd.f32 %v232_v60, %v173_v59 }
 0x2ad   :  { %233 = vlog2.f32 %v177_v61 }
 0x2b7   :  { %v234_v62 = vpop.eup %233 }
 0x2b8   :  { %v179_v63 = vmul.f32 0.6931472, %v234_v62 }
 0x2ba   :  { %v180_v0 = vadd.f32 %v179_v63, %v169_v47 }
 0x2bc   :  { %v181_v1 = vsub.f32 %v180_v0, %v166_v43 }
 0x2be   :  { %182 = vst.msk [vmem:[%s336_s3] sm:$0xff] %vm33_vm2, %v181_v1 }
 0x2bf   :  { %195 = vsyncpa [#allocation6], 1 }

</bundles_post_ra>
